<compile_context>
chip_gen: v5e
topology: v5e:2x2
jax: 0.10.0
libtpu: 0.0.40
codegen_flags: <defaults>
</compile_context>

<pallas_src>
import functools

import jax
import jax.numpy as jnp
import numpy as np
from jax.experimental import pallas as pl
from jax.experimental.pallas import tpu as pltpu

_LANE = 128
_SINGLE_BLOCK_MAX = 8192   # up to this many (128-padded) boxes -> 1 grid step
_MULTI_BLOCK_TILE = 8192   # tile width for large N (grid >= 2 steps)


def _oriented_iou_kernel(box_ref, out_ref, *, loss_type):
    # box_ref: (12, TILE) f32; rows 0-5 pred [x,y,w,h,a,b], rows 6-11 target.
    b = box_ref[...]

    px, py, pw, ph, pa, pb = b[0:1], b[1:2], b[2:3], b[3:4], b[4:5], b[5:6]
    tx, ty, tw, th, ta, tb = b[6:7], b[7:8], b[8:9], b[9:10], b[10:11], b[11:12]

    # half extents (shared by iou and giou branches)
    hpw = pw * 0.5
    hph = ph * 0.5
    htw = tw * 0.5
    hth = th * 0.5

    p_l = px - hpw
    p_r = px + hpw
    p_t = py - hph
    p_b = py + hph
    t_l = tx - htw
    t_r = tx + htw
    t_t = ty - hth
    t_b = ty + hth

    # intersection box
    tl_x = jnp.maximum(p_l, t_l)
    tl_y = jnp.maximum(p_t, t_t)
    br_x = jnp.minimum(p_r, t_r)
    br_y = jnp.minimum(p_b, t_b)

    area_p = pw * ph
    area_g = tw * th

    overlap = jnp.logical_and(tl_x < br_x, tl_y < br_y)
    area_i = jnp.where(overlap, (br_x - tl_x) * (br_y - tl_y), 0.0)
    area_u = area_p + area_g - area_i
    iou = area_i / (area_u + 1e-16)

    # MSELoss(reduction='none') on the two angle components -> elementwise
    da = pa - ta
    db = pb - tb
    angle = da * da + db * db

    if loss_type == "iou":
        loss = 1.0 - iou * iou + angle
    elif loss_type == "giou":
        c_tl_x = jnp.minimum(p_l, t_l)
        c_tl_y = jnp.minimum(p_t, t_t)
        c_br_x = jnp.maximum(p_r, t_r)
        c_br_y = jnp.maximum(p_b, t_b)
        area_c = (c_br_x - c_tl_x) * (c_br_y - c_tl_y)
        giou = iou - (area_c - area_u) / jnp.maximum(area_c, 1e-16)
        giou = jnp.clip(giou, -1.0, 1.0)
        loss = 1.0 - giou + angle
    else:
        raise ValueError(f"unknown loss_type {loss_type}")

    out_ref[...] = loss


def oriented_iou_loss(pred, target, reduction="none", loss_type="iou"):
    assert pred.shape[0] == target.shape[0]
    # TODO(synk): reduction='mean'/'sum' changes MSELoss broadcast semantics in
    # the reference module; only the default reduction='none' is implemented.
    assert reduction == "none"

    pred = jnp.reshape(pred, (-1, 6)).astype(jnp.float32)
    target = jnp.reshape(target, (-1, 6)).astype(jnp.float32)
    n = pred.shape[0]

    # Tile choice: one block for small/typical N, >=2 "parallel" steps for
    # large N (keeps both TensorCores busy on v7x; VMEM use is tiny either way).
    n128 = pl.cdiv(n, _LANE) * _LANE
    tile = n128 if n128 <= _SINGLE_BLOCK_MAX else _MULTI_BLOCK_TILE
    n_pad = pl.cdiv(n, tile) * tile
    grid = n_pad // tile

    # Single fused prep pass: (N, 12) -> (12, N_pad); padded lanes are zero
    # (they produce iou = 0 and are sliced off below).
    boxes = jnp.concatenate([pred, target], axis=1).T        # (12, N)
    boxes = jnp.pad(boxes, ((0, 0), (0, n_pad - n)))          # (12, N_pad)

    kernel = functools.partial(_oriented_iou_kernel, loss_type=loss_type)

    out = pl.pallas_call(
        kernel,
        out_shape=jax.ShapeDtypeStruct((1, n_pad), jnp.float32),
        grid=(grid,),
        in_specs=[pl.BlockSpec((12, tile), lambda i: (0, i))],
        out_specs=pl.BlockSpec((1, tile), lambda i: (0, i)),
        compiler_params=pltpu.CompilerParams(dimension_semantics=("parallel",)),
    )(boxes)

    return out[0, :n]


def _reference(pred, target, loss_type="iou"):
    pred = np.asarray(pred, np.float32).reshape(-1, 6)
    target = np.asarray(target, np.float32).reshape(-1, 6)
    tl = np.maximum(pred[:, :2] - pred[:, 2:4] / 2, target[:, :2] - target[:, 2:4] / 2)
    br = np.minimum(pred[:, :2] + pred[:, 2:4] / 2, target[:, :2] + target[:, 2:4] / 2)
    area_p = np.prod(pred[:, 2:4], 1)
    area_g = np.prod(target[:, 2:4], 1)
    en = (tl < br).astype(np.float32).prod(axis=1)
    area_i = np.prod(br - tl, 1) * en
    area_u = area_p + area_g - area_i
    iou = area_i / (area_u + 1e-16)
    la = (pred[:, 4] - target[:, 4]) ** 2
    lb = (pred[:, 5] - target[:, 5]) ** 2
    if loss_type == "giou":
        c_tl = np.minimum(pred[:, :2] - pred[:, 2:4] / 2,
                          target[:, :2] - target[:, 2:4] / 2)
        c_br = np.maximum(pred[:, :2] + pred[:, 2:4] / 2,
                          target[:, :2] + target[:, 2:4] / 2)
        area_c = np.prod(c_br - c_tl, 1)
        giou = iou - (area_c - area_u) / np.maximum(area_c, 1e-16)
        giou = np.clip(giou, -1.0, 1.0)
        return 1 - giou + la + lb
    return 1 - iou ** 2 + la + lb


if __name__ == "__main__":
    key = jax.random.PRNGKey(0)
    k1, k2, k3, k4 = jax.random.split(key, 4)

    # Small case (module-sized): 8 boxes, [cx, cy, w, h, alpha, beta]
    n_boxes = 8
    pred = jax.random.uniform(k1, (n_boxes, 6), jnp.float32, minval=0.1, maxval=4.0)
    target = jax.random.uniform(k2, (n_boxes, 6), jnp.float32, minval=0.1, maxval=4.0)

    loss = oriented_iou_loss(pred, target, reduction="none", loss_type="iou")
    loss = jax.block_until_ready(loss)
    ref = _reference(np.asarray(pred), np.asarray(target), loss_type="iou")
    assert loss.shape == (n_boxes,)
    assert np.allclose(np.asarray(loss), ref, rtol=1e-5, atol=1e-5), (loss, ref)

    loss_g = oriented_iou_loss(pred, target, reduction="none", loss_type="giou")
    loss_g = jax.block_until_ready(loss_g)
    ref_g = _reference(np.asarray(pred), np.asarray(target), loss_type="giou")
    assert np.allclose(np.asarray(loss_g), ref_g, rtol=1e-5, atol=1e-5), (loss_g, ref_g)

    # Non-multiple-of-128 case to exercise lane padding within one block.
    n2 = 300
    pred2 = jax.random.uniform(k3, (n2, 6), jnp.float32, minval=0.1, maxval=4.0)
    target2 = jax.random.uniform(k4, (n2, 6), jnp.float32, minval=0.1, maxval=4.0)
    loss2 = jax.block_until_ready(
        oriented_iou_loss(pred2, target2, reduction="none", loss_type="iou"))
    ref2 = _reference(np.asarray(pred2), np.asarray(target2), loss_type="iou")
    assert loss2.shape == (n2,)
    assert np.allclose(np.asarray(loss2), ref2, rtol=1e-5, atol=1e-5)

    print("KERNEL_OK")
</pallas_src>

<mosaic_0001>
module attributes {stable_mosaic.version = 11 : i64} {
  func.func @_oriented_iou_kernel(%arg0: i32, %arg1: memref<12x128xf32, #tpu.memory_space<vmem>>, %arg2: memref<1x128xf32, #tpu.memory_space<vmem>>) attributes {dimension_semantics = [#tpu.dimension_semantics<parallel>], iteration_bounds = array<i64: 1>, scalar_prefetch = 0 : i64, scratch_operands = 0 : i64, tpu.core_type = #tpu.core_type<tc>, window_params = [{transform_indices = @transform_0, window_bounds = array<i64: 12, 128>}, {transform_indices = @transform_1, window_bounds = array<i64: 1, 128>}]} {
    %c0 = arith.constant 0 : index
    %c0_0 = arith.constant 0 : index
    %0 = vector.load %arg1[%c0, %c0_0] : memref<12x128xf32, #tpu.memory_space<vmem>>, vector<12x128xf32>
    %1 = vector.extract_strided_slice %0 {offsets = [0, 0], sizes = [1, 128], strides = [1, 1]} : vector<12x128xf32> to vector<1x128xf32>
    %2 = vector.extract_strided_slice %0 {offsets = [1, 0], sizes = [1, 128], strides = [1, 1]} : vector<12x128xf32> to vector<1x128xf32>
    %3 = vector.extract_strided_slice %0 {offsets = [2, 0], sizes = [1, 128], strides = [1, 1]} : vector<12x128xf32> to vector<1x128xf32>
    %4 = vector.extract_strided_slice %0 {offsets = [3, 0], sizes = [1, 128], strides = [1, 1]} : vector<12x128xf32> to vector<1x128xf32>
    %5 = vector.extract_strided_slice %0 {offsets = [4, 0], sizes = [1, 128], strides = [1, 1]} : vector<12x128xf32> to vector<1x128xf32>
    %6 = vector.extract_strided_slice %0 {offsets = [5, 0], sizes = [1, 128], strides = [1, 1]} : vector<12x128xf32> to vector<1x128xf32>
    %7 = vector.extract_strided_slice %0 {offsets = [6, 0], sizes = [1, 128], strides = [1, 1]} : vector<12x128xf32> to vector<1x128xf32>
    %8 = vector.extract_strided_slice %0 {offsets = [7, 0], sizes = [1, 128], strides = [1, 1]} : vector<12x128xf32> to vector<1x128xf32>
    %9 = vector.extract_strided_slice %0 {offsets = [8, 0], sizes = [1, 128], strides = [1, 1]} : vector<12x128xf32> to vector<1x128xf32>
    %10 = vector.extract_strided_slice %0 {offsets = [9, 0], sizes = [1, 128], strides = [1, 1]} : vector<12x128xf32> to vector<1x128xf32>
    %11 = vector.extract_strided_slice %0 {offsets = [10, 0], sizes = [1, 128], strides = [1, 1]} : vector<12x128xf32> to vector<1x128xf32>
    %12 = vector.extract_strided_slice %0 {offsets = [11, 0], sizes = [1, 128], strides = [1, 1]} : vector<12x128xf32> to vector<1x128xf32>
    %cst = arith.constant 5.000000e-01 : f32
    %13 = vector.broadcast %cst : f32 to vector<1x128xf32>
    %14 = arith.mulf %3, %13 : vector<1x128xf32>
    %cst_1 = arith.constant 5.000000e-01 : f32
    %15 = vector.broadcast %cst_1 : f32 to vector<1x128xf32>
    %16 = arith.mulf %4, %15 : vector<1x128xf32>
    %cst_2 = arith.constant 5.000000e-01 : f32
    %17 = vector.broadcast %cst_2 : f32 to vector<1x128xf32>
    %18 = arith.mulf %9, %17 : vector<1x128xf32>
    %cst_3 = arith.constant 5.000000e-01 : f32
    %19 = vector.broadcast %cst_3 : f32 to vector<1x128xf32>
    %20 = arith.mulf %10, %19 : vector<1x128xf32>
    %21 = arith.subf %1, %14 : vector<1x128xf32>
    %22 = arith.addf %1, %14 : vector<1x128xf32>
    %23 = arith.subf %2, %16 : vector<1x128xf32>
    %24 = arith.addf %2, %16 : vector<1x128xf32>
    %25 = arith.subf %7, %18 : vector<1x128xf32>
    %26 = arith.addf %7, %18 : vector<1x128xf32>
    %27 = arith.subf %8, %20 : vector<1x128xf32>
    %28 = arith.addf %8, %20 : vector<1x128xf32>
    %29 = arith.maximumf %21, %25 : vector<1x128xf32>
    %30 = arith.maximumf %23, %27 : vector<1x128xf32>
    %31 = arith.minimumf %22, %26 : vector<1x128xf32>
    %32 = arith.minimumf %24, %28 : vector<1x128xf32>
    %33 = arith.mulf %3, %4 : vector<1x128xf32>
    %34 = arith.mulf %9, %10 : vector<1x128xf32>
    %35 = arith.cmpf olt, %29, %31 : vector<1x128xf32>
    %36 = arith.cmpf olt, %30, %32 : vector<1x128xf32>
    %37 = arith.andi %35, %36 : vector<1x128xi1>
    %38 = arith.subf %31, %29 : vector<1x128xf32>
    %39 = arith.subf %32, %30 : vector<1x128xf32>
    %40 = arith.mulf %38, %39 : vector<1x128xf32>
    %cst_4 = arith.constant 0.000000e+00 : f32
    %41 = vector.broadcast %cst_4 : f32 to vector<1x128xf32>
    %42 = arith.select %37, %40, %41 : vector<1x128xi1>, vector<1x128xf32>
    %43 = arith.addf %33, %34 : vector<1x128xf32>
    %44 = arith.subf %43, %42 : vector<1x128xf32>
    %cst_5 = arith.constant 1.000000e-16 : f32
    %45 = vector.broadcast %cst_5 : f32 to vector<1x128xf32>
    %46 = arith.addf %44, %45 : vector<1x128xf32>
    %47 = arith.divf %42, %46 : vector<1x128xf32>
    %48 = arith.subf %5, %11 : vector<1x128xf32>
    %49 = arith.subf %6, %12 : vector<1x128xf32>
    %50 = arith.mulf %48, %48 : vector<1x128xf32>
    %51 = arith.mulf %49, %49 : vector<1x128xf32>
    %52 = arith.addf %50, %51 : vector<1x128xf32>
    %53 = arith.mulf %47, %47 : vector<1x128xf32>
    %cst_6 = arith.constant 1.000000e+00 : f32
    %54 = vector.broadcast %cst_6 : f32 to vector<1x128xf32>
    %55 = arith.subf %54, %53 : vector<1x128xf32>
    %56 = arith.addf %55, %52 : vector<1x128xf32>
    %c0_7 = arith.constant 0 : index
    %c0_8 = arith.constant 0 : index
    %57 = vector.load %arg2[%c0_7, %c0_8] : memref<1x128xf32, #tpu.memory_space<vmem>>, vector<1x128xf32>
    tpu.vector_store %arg2[%c0_7, %c0_8], %56 {strides = array<i32>} : memref<1x128xf32, #tpu.memory_space<vmem>>, vector<1x128xf32>,
    return
  }
  func.func @transform_0(%arg0: i32) -> (i32, i32) {
    %c0_i32 = arith.constant 0 : i32
    %c0_i32_0 = arith.constant 0 : i32
    return %c0_i32, %arg0 : i32, i32
  }
  func.func @transform_1(%arg0: i32) -> (i32, i32) {
    %c0_i32 = arith.constant 0 : i32
    %c0_i32_0 = arith.constant 0 : i32
    return %c0_i32, %arg0 : i32, i32
  }
}

</mosaic_0001>

<bundles_post_ra>
// kernel: tpu_custom_call.1
= control target key start
LH: loop header
LB: loop body
LE: loop exit
PB: predicated region body
PF: predicated region fallthrough
CT: control target
= control target key end

     0   :  { %6 = vsyncpa [#allocation3], 0  ;;  %s205_s0 = inlined_call_operand.hbm [shape: f32[12,128], index: 0, kind: input, shape index: {}]   ;;  %s206_s1 = inlined_call_operand.hbm [shape: f32[1,128], index: 1, kind: output, shape index: {}]  }
   0x1   :  { %7 = vsyncpa [#allocation4], 0  ;;  %s12_s8 = sshll.u32 %s205_s0, 4  ;;  %s184_s9 = smov [#allocation2]   ;;  %s13_s8 = int_to_ptr.hbm [resolvable:$true] %s12_s8 }
   0x2   :  { %s14_s10 = sshll.u32 %s184_s9, 4  ;;  %s185_s11 = smov 128   ;;  %s15_s10 = int_to_ptr.vmem [resolvable:$true] %s14_s10 }
   0x3   :  { %s186_s12 = smov 8  }
   0x4   :  { %20 = dma.hbm_to_vmem [thread:$0]  %s13_s8, 256, %s15_s10, [#allocation3], %s185_s11, %s185_s11, %s186_s12  }
   0x5   :  { %180 = dma.done.wait [#allocation3], 256  }
   0x6   :  { %181 = vsyncadd [#allocation3], 4294967040  ;;  %v25_v0 = vld [vmem:[#allocation2] sm:$0xff]  ;;  %v26_v1 = vld [vmem:[#allocation2 + $0x8] sm:$0xf]  ;;  %v187_v19 = vmov 0  }
   0x7   :  { %v27_v2 = vmul.f32 0.5, %v25_v0  ;;  %v28_v3 = vmul.f32 0.5, %v26_v1  ;;  %v52_v6 = vrot.slane %v26_v1, 1  ;;  %v48_v13 = vrot.slane %v25_v0, 1  ;;  %s188_s0 = smov [#allocation5]   ;;  %s115_s16 = sshll.u32 %s206_s1, 4  ;;  %s116_s16 = int_to_ptr.hbm [resolvable:$true] %s115_s16 }
   0x8   :  { %v93_v31 = vrot.slane %v26_v1, 6  ;;  %s113_s13 = sshll.u32 %s188_s0, 4  ;;  %s114_s13 = int_to_ptr.vmem [resolvable:$true] %s113_s13 }
   0x9   :  { %v30_v4 = vrot.slane %v27_v2, 2  ;;  %v35_v5 = vrot.slane %v28_v3, 2  ;;  %v54_v14 = vmul.f32 %v52_v6, %v26_v1  ;;  %v50_v18 = vmul.f32 %v48_v13, %v25_v0 }
   0xa   :  { %v95_v32 = vsub.f32 %v25_v0, %v93_v31 }
   0xb   :  { %v32_v7 = vsub.f32 %v25_v0, %v30_v4  ;;  %v33_v8 = vadd.f32 %v30_v4, %v25_v0  ;;  %v37_v9 = vsub.f32 %v25_v0, %v35_v5  ;;  %v38_v10 = vadd.f32 %v35_v5, %v25_v0 }
   0xc   :  { %v67_v21 = vrot.slane %v54_v14, 6  ;;  %v96_v35 = vmul.f32 %v95_v32, %v95_v32 }
   0xd   :  { %v40_v11 = vrot.slane %v37_v9, 6  ;;  %v44_v12 = vrot.slane %v38_v10, 6 }
   0xe   :  { %v69_v25 = vadd.f32 %v67_v21, %v50_v18  ;;  %v98_v40 = vrot.slane %v96_v35, 1 }
   0xf   :  { %v42_v15 = vmax.f32 %v32_v7, %v40_v11  ;;  %v46_v16 = vmin.f32 %v33_v8, %v44_v12 }
  0x10   :  { %v100_v44 = vadd.f32 %v98_v40, %v96_v35 }
  0x11   :  { %vm55_vm0 = vcmp.lt.f32.partialorder %v42_v15, %v46_v16  ;;  %v60_v17 = vsub.f32 %v46_v16, %v42_v15 }
  0x12   :  { %v56_v20 = vsel %vm55_vm0, 1, %v187_v19  ;;  %v104_v48 = vrot.slane %v100_v44, 4 }
  0x13   :  { %v57_v22 = vrot.slane %v56_v20, 1  ;;  %v62_v23 = vrot.slane %v60_v17, 1 }
  0x15   :  { %vm58_vm1 = vcmp.ne.s32.totalorder %v57_v22, 0  ;;  %v64_v24 = vmul.f32 %v62_v23, %v60_v17 }
  0x16   :  { %vm59_vm2 = vmand %vm55_vm0, %vm58_vm1 }
  0x17   :  { %v65_v26 = vsel %vm59_vm2, %v64_v24, 0.0 }
  0x18   :  { %v71_v27 = vrot.slane %v65_v26, 6 }
  0x1a   :  { %v73_v28 = vsub.f32 %v69_v25, %v71_v27 }
  0x1c   :  { %v74_v29 = vadd.f32 1e-16, %v73_v28 }
  0x1e   :  { %v76_v30 = vrot.slane %v74_v29, 2 }
  0x20   :  { %130 = vrcp.f32 %v76_v30  ;;  %v89_v36 = vand.u32 2147483648, %v76_v30  ;;  %vm83_vm3 = vweird.f32 %v76_v30  ;;  %v87_v38 = vand.u32 2147483647, %v76_v30 }
  0x22   :  { %v90_v41 = vor.u32 1.1754944e-38, %v89_v36  ;;  %vm88_vm6 = vcmp.eq.f32.partialorder %v87_v38, 8.507059e+37 }
  0x26   :  { %v131_v33 = vpop.eup %130 }
  0x27   :  { %v79_v34 = vmul.f32 %v131_v33, %v76_v30  ;;  %vm84_vm4 = vweird.f32 %v131_v33 }
  0x28   :  { %vm85_vm5 = vmor %vm83_vm3, %vm84_vm4 }
  0x29   :  { %v80_v37 = vsub.f32 1.0, %v79_v34 }
  0x2b   :  { %v81_v39 = vmul.f32 %v131_v33, %v80_v37 }
  0x2d   :  { %v82_v42 = vadd.f32 %v131_v33, %v81_v39 }
  0x2f   :  { %v86_v43 = vsel %vm85_vm5, %v131_v33, %v82_v42 }
  0x30   :  { %v91_v45 = vsel %vm88_vm6, %v90_v41, %v86_v43 }
  0x31   :  { %v92_v46 = vmul.f32 %v91_v45, %v65_v26 }
  0x33   :  { %v101_v47 = vmul.f32 %v92_v46, %v92_v46 }
  0x35   :  { %v102_v49 = vsub.f32 1.0, %v101_v47 }
  0x37   :  { %v106_v50 = vadd.f32 %v104_v48, %v102_v49 }
  0x39   :  { %107 = vst [vmem:[#allocation5] sm:$0x1] %v106_v50 }
  0x3a   :  { %118 = dma.vmem_to_hbm [thread:$0]  %s114_s13, 16, %s116_s16, [#allocation4]  }
  0x3b   :  { %182 = dma.done.wait [#allocation4], 16  }
  0x3c   :  { %183 = vsyncadd [#allocation4], 4294967280 }
  0x3d   :  { %123 = vsyncpa [#allocation3], 1 }
  0x3e   :  { %124 = vsyncpa [#allocation4], 1 }

</bundles_post_ra>
